<compile_context>
chip_gen: v5e
topology: v5e:2x2
jax: 0.10.0
libtpu: 0.0.40
codegen_flags: <defaults>
</compile_context>

<pallas_src>
import jax
import jax.numpy as jnp
from jax.experimental import pallas as pl
from jax.experimental.pallas import tpu as pltpu  # noqa: F401  (TPU backend)

INV_SCALE_FACTOR = 30.0
DROPOUT_P = 0.1


def _attn_dropout_kernel(q_ref, k_ref, v_ref, drop_ref, o_ref):
    # Whole problem in one block:
    #   q: (BH, M, D), k/v: (BH, N, D), drop: (BH, M, N), o: (BH, M, D), D == 2.
    q = q_ref[...]
    k = k_ref[...]
    v = v_ref[...]
    drop = drop_ref[...]

    # qk[b, m, n] = sum_d q[b, m, d] * k[b, n, d]
    # D == 2 -> two VPU broadcast multiply-adds; no MXU, no k.T relayout.
    q0 = q[:, :, 0]
    q1 = q[:, :, 1]
    k0 = k[:, :, 0]
    k1 = k[:, :, 1]
    s = q0[:, :, None] * k0[:, None, :] + q1[:, :, None] * k1[:, None, :]
    s = s * (1.0 / INV_SCALE_FACTOR)

    # Numerically stable softmax over the last axis.
    s = s - jnp.max(s, axis=-1, keepdims=True)
    e = jnp.exp(s)
    p = e * pl.reciprocal(jnp.sum(e, axis=-1, keepdims=True), approx=True)

    # Train-mode dropout: pre-scaled multiplier keep/(1-p) drawn in the wrapper.
    p = p * drop

    # out[b, m, d] = sum_n p[b, m, n] * v[b, n, d]  (two lane reductions).
    v0 = v[:, :, 0]
    v1 = v[:, :, 1]
    o0 = jnp.sum(p * v0[:, None, :], axis=-1, keepdims=True)   # (BH, M, 1)
    o1 = jnp.sum(p * v1[:, None, :], axis=-1, keepdims=True)   # (BH, M, 1)
    o_ref[...] = jnp.concatenate([o0, o1], axis=-1)            # single store


@jax.jit
def attention_dropout(q, k, v, rng_key):
    # q: (B, H, M, D), k/v: (B, H, N, D); kernel unrolls over D == 2.
    B, H, M, D = q.shape
    N = k.shape[2]
    BH = B * H
    qf = q.reshape(BH, M, D).astype(jnp.float32)
    kf = k.reshape(BH, N, D).astype(jnp.float32)
    vf = v.reshape(BH, N, D).astype(jnp.float32)

    # Dropout multiplier: keep with prob (1-p), survivors scaled by 1/(1-p).
    # TODO(synk): RNG stream is JAX threefry, never bit-matches torch's RNG;
    # Bernoulli(keep=0.9) + 1/(1-p) scaling semantics are preserved.
    keep = jax.random.bernoulli(rng_key, 1.0 - DROPOUT_P, (BH, M, N))
    drop_mult = keep.astype(jnp.float32) * (1.0 / (1.0 - DROPOUT_P))

    flops = 2 * BH * M * N * D * 2  # the two contractions
    bytes_accessed = 4 * (qf.size + kf.size + vf.size + drop_mult.size + BH * M * D)
    out = pl.pallas_call(
        _attn_dropout_kernel,
        out_shape=jax.ShapeDtypeStruct((BH, M, D), jnp.float32),
        cost_estimate=pl.CostEstimate(
            flops=flops,
            transcendentals=BH * M * N,
            bytes_accessed=bytes_accessed,
        ),
    )(qf, kf, vf, drop_mult)

    return out.reshape(B, H, M, D)


if __name__ == "__main__":
    # Deterministic inputs matching the module's shapes:
    #   query: (1, 3, 10, 2), key: (1, 3, 20, 2), value: (1, 3, 20, 2)
    root = jax.random.PRNGKey(0)
    kq, kk, kv, kd = jax.random.split(root, 4)
    query = jax.random.normal(kq, (1, 3, 10, 2), dtype=jnp.float32)
    key = jax.random.normal(kk, (1, 3, 20, 2), dtype=jnp.float32)
    value = jax.random.normal(kv, (1, 3, 20, 2), dtype=jnp.float32)

    out = attention_dropout(query, key, value, kd)
    jax.block_until_ready(out)
    assert out.shape == (1, 3, 10, 2), out.shape
    assert bool(jnp.all(jnp.isfinite(out)))

    # Pure-JAX reference using the same math and the SAME dropout mask the
    # wrapper draws (deterministic threefry with key kd).
    B, H, M, D = query.shape
    N = key.shape[2]
    qk = jnp.einsum("bhmd,bhnd->bhmn", query, key) / INV_SCALE_FACTOR
    p_ref = jax.nn.softmax(qk, axis=-1)
    keep_ref = jax.random.bernoulli(kd, 1.0 - DROPOUT_P, (B * H, M, N))
    drop_ref = (keep_ref.astype(jnp.float32) / (1.0 - DROPOUT_P)).reshape(B, H, M, N)
    ref = jnp.einsum("bhmn,bhnd->bhmd", p_ref * drop_ref, value)

    # approx reciprocal (EUP) -> bf16-level precision on the softmax denom.
    max_err = float(jnp.max(jnp.abs(out - ref)))
    assert jnp.allclose(out, ref, rtol=2e-2, atol=2e-3), max_err

    print("KERNEL_OK")
</pallas_src>

<mosaic_0001>
module attributes {stable_mosaic.version = 11 : i64} {
  func.func @_attn_dropout_kernel(%arg0: memref<3x10x2xf32, #tpu.memory_space<vmem>>, %arg1: memref<3x20x2xf32, #tpu.memory_space<vmem>>, %arg2: memref<3x20x2xf32, #tpu.memory_space<vmem>>, %arg3: memref<3x10x20xf32, #tpu.memory_space<vmem>>, %arg4: memref<3x10x2xf32, #tpu.memory_space<vmem>>) attributes {dimension_semantics = [], scalar_prefetch = 0 : i64, scratch_operands = 0 : i64, tpu.core_type = #tpu.core_type<tc>} {
    %c0 = arith.constant 0 : index
    %c0_0 = arith.constant 0 : index
    %c0_1 = arith.constant 0 : index
    %0 = vector.load %arg0[%c0, %c0_0, %c0_1] : memref<3x10x2xf32, #tpu.memory_space<vmem>>, vector<3x10x2xf32>
    %c0_2 = arith.constant 0 : index
    %c0_3 = arith.constant 0 : index
    %c0_4 = arith.constant 0 : index
    %1 = vector.load %arg1[%c0_2, %c0_3, %c0_4] : memref<3x20x2xf32, #tpu.memory_space<vmem>>, vector<3x20x2xf32>
    %c0_5 = arith.constant 0 : index
    %c0_6 = arith.constant 0 : index
    %c0_7 = arith.constant 0 : index
    %2 = vector.load %arg2[%c0_5, %c0_6, %c0_7] : memref<3x20x2xf32, #tpu.memory_space<vmem>>, vector<3x20x2xf32>
    %c0_8 = arith.constant 0 : index
    %c0_9 = arith.constant 0 : index
    %c0_10 = arith.constant 0 : index
    %3 = vector.load %arg3[%c0_8, %c0_9, %c0_10] : memref<3x10x20xf32, #tpu.memory_space<vmem>>, vector<3x10x20xf32>
    %4 = vector.extract_strided_slice %0 {offsets = [0, 0, 0], sizes = [3, 10, 1], strides = [1, 1, 1]} : vector<3x10x2xf32> to vector<3x10x1xf32>
    %5 = vector.shape_cast %4 : vector<3x10x1xf32> to vector<3x10xf32>
    %6 = vector.extract_strided_slice %0 {offsets = [0, 0, 1], sizes = [3, 10, 1], strides = [1, 1, 1]} : vector<3x10x2xf32> to vector<3x10x1xf32>
    %7 = vector.shape_cast %6 : vector<3x10x1xf32> to vector<3x10xf32>
    %8 = vector.extract_strided_slice %1 {offsets = [0, 0, 0], sizes = [3, 20, 1], strides = [1, 1, 1]} : vector<3x20x2xf32> to vector<3x20x1xf32>
    %9 = vector.shape_cast %8 : vector<3x20x1xf32> to vector<3x20xf32>
    %10 = vector.extract_strided_slice %1 {offsets = [0, 0, 1], sizes = [3, 20, 1], strides = [1, 1, 1]} : vector<3x20x2xf32> to vector<3x20x1xf32>
    %11 = vector.shape_cast %10 : vector<3x20x1xf32> to vector<3x20xf32>
    %12 = vector.shape_cast %5 : vector<3x10xf32> to vector<3x10x1xf32>
    %13 = vector.shape_cast %9 : vector<3x20xf32> to vector<3x1x20xf32>
    %14 = vector.broadcast %12 : vector<3x10x1xf32> to vector<3x10x20xf32>
    %15 = vector.broadcast %13 : vector<3x1x20xf32> to vector<3x10x20xf32>
    %16 = arith.mulf %14, %15 : vector<3x10x20xf32>
    %17 = vector.shape_cast %7 : vector<3x10xf32> to vector<3x10x1xf32>
    %18 = vector.shape_cast %11 : vector<3x20xf32> to vector<3x1x20xf32>
    %19 = vector.broadcast %17 : vector<3x10x1xf32> to vector<3x10x20xf32>
    %20 = vector.broadcast %18 : vector<3x1x20xf32> to vector<3x10x20xf32>
    %21 = arith.mulf %19, %20 : vector<3x10x20xf32>
    %22 = arith.addf %16, %21 : vector<3x10x20xf32>
    %cst = arith.constant 0.0333333351 : f32
    %23 = vector.broadcast %cst : f32 to vector<3x10x20xf32>
    %24 = arith.mulf %22, %23 : vector<3x10x20xf32>
    %cst_11 = arith.constant dense<0xFF800000> : vector<3x10xf32>
    %25 = vector.multi_reduction <maximumf>, %24, %cst_11 [2] : vector<3x10x20xf32> to vector<3x10xf32>
    %26 = vector.shape_cast %25 : vector<3x10xf32> to vector<3x10x1xf32>
    %27 = vector.broadcast %26 : vector<3x10x1xf32> to vector<3x10x20xf32>
    %28 = arith.subf %24, %27 : vector<3x10x20xf32>
    %29 = math.exp %28 : vector<3x10x20xf32>
    %cst_12 = arith.constant dense<0.000000e+00> : vector<3x10xf32>
    %30 = vector.multi_reduction <add>, %29, %cst_12 [2] : vector<3x10x20xf32> to vector<3x10xf32>
    %31 = vector.shape_cast %30 : vector<3x10xf32> to vector<3x10x1xf32>
    %32 = tpu.reciprocal %31 {approx = true} : vector<3x10x1xf32> -> vector<3x10x1xf32>
    %33 = vector.broadcast %32 : vector<3x10x1xf32> to vector<3x10x20xf32>
    %34 = arith.mulf %29, %33 : vector<3x10x20xf32>
    %35 = arith.mulf %34, %3 : vector<3x10x20xf32>
    %36 = vector.extract_strided_slice %2 {offsets = [0, 0, 0], sizes = [3, 20, 1], strides = [1, 1, 1]} : vector<3x20x2xf32> to vector<3x20x1xf32>
    %37 = vector.shape_cast %36 : vector<3x20x1xf32> to vector<3x20xf32>
    %38 = vector.extract_strided_slice %2 {offsets = [0, 0, 1], sizes = [3, 20, 1], strides = [1, 1, 1]} : vector<3x20x2xf32> to vector<3x20x1xf32>
    %39 = vector.shape_cast %38 : vector<3x20x1xf32> to vector<3x20xf32>
    %40 = vector.shape_cast %37 : vector<3x20xf32> to vector<3x1x20xf32>
    %41 = vector.broadcast %40 : vector<3x1x20xf32> to vector<3x10x20xf32>
    %42 = arith.mulf %35, %41 : vector<3x10x20xf32>
    %cst_13 = arith.constant dense<0.000000e+00> : vector<3x10xf32>
    %43 = vector.multi_reduction <add>, %42, %cst_13 [2] : vector<3x10x20xf32> to vector<3x10xf32>
    %44 = vector.shape_cast %43 : vector<3x10xf32> to vector<3x10x1xf32>
    %45 = vector.shape_cast %39 : vector<3x20xf32> to vector<3x1x20xf32>
    %46 = vector.broadcast %45 : vector<3x1x20xf32> to vector<3x10x20xf32>
    %47 = arith.mulf %35, %46 : vector<3x10x20xf32>
    %cst_14 = arith.constant dense<0.000000e+00> : vector<3x10xf32>
    %48 = vector.multi_reduction <add>, %47, %cst_14 [2] : vector<3x10x20xf32> to vector<3x10xf32>
    %49 = vector.shape_cast %48 : vector<3x10xf32> to vector<3x10x1xf32>
    %50 = tpu.concatenate %44, %49 in 2 : vector<3x10x1xf32>, vector<3x10x1xf32> -> vector<3x10x2xf32>
    %c0_15 = arith.constant 0 : index
    %c0_16 = arith.constant 0 : index
    %c0_17 = arith.constant 0 : index
    %51 = vector.load %arg4[%c0_15, %c0_16, %c0_17] : memref<3x10x2xf32, #tpu.memory_space<vmem>>, vector<3x10x2xf32>
    tpu.vector_store %arg4[%c0_15, %c0_16, %c0_17], %50 {strides = array<i32>} : memref<3x10x2xf32, #tpu.memory_space<vmem>>, vector<3x10x2xf32>,
    return
  }
}

</mosaic_0001>

<bundles_post_ra>
// kernel: attention_dropout.1
= control target key start
LH: loop header
LB: loop body
LE: loop exit
PB: predicated region body
PF: predicated region fallthrough
CT: control target
= control target key end

     0   :  { %v597_v0 = vmov 1   ;;  %v598_v1 = vmov 0   ;;  %v113_v36 = vlaneseq  ;;  %vm118_vm0 = vcmask 130112   ;;  %s937_s0 = inlined_call_operand.vmem [shape: f32[3,10,2], index: 0, kind: input, shape index: {}]   ;;  %s938_s1 = inlined_call_operand.vmem [shape: f32[3,20,2], index: 1, kind: input, shape index: {}]   ;;  %s939_s2 = inlined_call_operand.vmem [shape: f32[3,20,2], index: 2, kind: input, shape index: {}]   ;;  %s940_s3 = inlined_call_operand.vmem [shape: f32[3,10,20], index: 3, kind: input, shape index: {}]   ;;  %s941_s4 = inlined_call_operand.vmem [shape: f32[3,10,2], index: 4, kind: output, shape index: {}]  }
   0x1   :  { %564 = vset.pattern.permute.xlu0 %v597_v0  ;;  %563 = vset.pattern.permute.xlu2 %v598_v1  ;;  %v21_v2 = vld [vmem:[%s937_s0 + $0x20] sm:$0xff]  ;;  %v19_v3 = vld [vmem:[%s937_s0 + $0x10] sm:$0xff]  ;;  %v22_v5 = vld [vmem:[%s937_s0 + $0x28] sm:$0x3]  ;;  %vm122_vm1 = vcmask 195712   ;;  %vm282_vm2 = vcmask 156672  }
   0x2   :  { %v17_v4 = vld [vmem:[%s937_s0] sm:$0xff]  ;;  %562 = vset.pattern.permute.xlu1 %v598_v1  ;;  %69 = vperm.xlu2 %563, %v21_v2   ;;  %v20_v6 = vld [vmem:[%s937_s0 + $0x18] sm:$0x3]  ;;  %v25_v7 = vld [vmem:[%s938_s1 + $0x10] sm:$0xf]  ;;  %v690_v40 = vand.u32 127, %v113_v36 }
   0x3   :  { %59 = vperm.xlu1 %562, %v19_v3   ;;  %171 = vperm.xlu0 %564, %v17_v4   ;;  %v24_v8 = vld [vmem:[%s938_s1 + $0x8] sm:$0xff]  ;;  %v27_v10 = vld [vmem:[%s938_s1 + $0x20] sm:$0xff]  ;;  %v30_v12 = vld [vmem:[%s938_s1 + $0x38] sm:$0xff]  ;;  %vm278_vm3 = vcmask 162816   ;;  %vm541_vm4 = vcmask 7168   ;;  %vm548_vm5 = vcmask 15360  }
   0x4   :  { %v28_v9 = vld [vmem:[%s938_s1 + $0x28] sm:$0xf]  ;;  %v31_v11 = vld [vmem:[%s938_s1 + $0x40] sm:$0xf]  ;;  %v26_v15 = vld [vmem:[%s938_s1 + $0x18] sm:$0xff]  ;;  %v693_v41 = vadd.s32 4294967288, %v690_v40 }
   0x5   :  { %v18_v13 = vld [vmem:[%s937_s0 + $0x8] sm:$0x3]  ;;  %v23_v14 = vld [vmem:[%s938_s1] sm:$0xff]  ;;  %v29_v16 = vld [vmem:[%s938_s1 + $0x30] sm:$0xff]  ;;  %v696_v42 = vadd.s32 4294967280, %v690_v40  ;;  %vm550_vm6 = vcmask 9216  }
   0xa   :  { %74 = vperm.xlu2 %563, %v22_v5  }
   0xb   :  { %64 = vperm.xlu1 %562, %v20_v6   ;;  %191 = vperm.xlu0 %564, %v22_v5  }
  0x12   :  { %93 = vperm.xlu2 %563, %v25_v7  }
  0x13   :  { %90 = vperm.xlu1 %562, %v24_v8   ;;  %201 = vperm.xlu0 %564, %v25_v7  }
  0x1a   :  { %102 = vperm.xlu2 %563, %v28_v9  }
  0x1b   :  { %99 = vperm.xlu1 %562, %v27_v10   ;;  %210 = vperm.xlu0 %564, %v28_v9  }
  0x22   :  { %111 = vperm.xlu2 %563, %v31_v11  }
  0x23   :  { %108 = vperm.xlu1 %562, %v30_v12   ;;  %219 = vperm.xlu0 %564, %v31_v11  }
  0x2a   :  { %566 = vset.pattern.permute.xlu2 %v597_v0 }
  0x2b   :  { %565 = vset.pattern.permute.xlu1 %v597_v0  ;;  %567 = vset.pattern.permute.xlu0 %v598_v1 }
  0x2c   :  { %179 = vperm.xlu2 %566, %v19_v3   ;;  %175 = vperm.xlu1 %565, %v18_v13  }
  0x2d   :  { %49 = vperm.xlu0 %567, %v17_v4  }
  0x34   :  { %187 = vperm.xlu2 %566, %v21_v2   ;;  %183 = vperm.xlu1 %565, %v20_v6  }
  0x35   :  { %54 = vperm.xlu0 %567, %v18_v13  }
  0x3c   :  { %198 = vperm.xlu2 %566, %v24_v8   ;;  %195 = vperm.xlu1 %565, %v23_v14  }
  0x3d   :  { %87 = vperm.xlu0 %567, %v23_v14  }
  0x44   :  { %207 = vperm.xlu2 %566, %v27_v10   ;;  %204 = vperm.xlu1 %565, %v26_v15  }
  0x45   :  { %96 = vperm.xlu0 %567, %v26_v15  }
  0x4c   :  { %216 = vperm.xlu2 %566, %v30_v12   ;;  %213 = vperm.xlu1 %565, %v29_v16  }
  0x4d   :  { %105 = vperm.xlu0 %567, %v29_v16  }
  0x54   :  { %568 = vset.pattern.permute.xlu1 %v598_v1  ;;  %569 = vset.pattern.permute.xlu2 %v598_v1 }
  0x5c   :  { %v672_v17 = vpop.permute.xlu2 %69 }
  0x64   :  { %v674_v18 = vpop.permute.xlu2 %74 }
  0x6c   :  { %v94_v21 = vpop.permute.xlu2 %93 }
  0x6d   :  { %v121_v50 = vperm.slane %v94_v21, %v696_v42 }
  0x74   :  { %v103_v24 = vpop.permute.xlu2 %102 }
  0x75   :  { %v676_v19 = vpop.permute.xlu1 %59  ;;  %v172_v20 = vpop.permute.xlu0 %171  ;;  %v127_v8 = vperm.slane %v103_v24, %v696_v42 }
  0x7c   :  { %v682_v27 = vpop.permute.xlu2 %111 }
  0x7d   :  { %v678_v22 = vpop.permute.xlu1 %64  ;;  %v680_v23 = vpop.permute.xlu0 %191 }
  0x85   :  { %v91_v25 = vpop.permute.xlu1 %90  ;;  %v202_v26 = vpop.permute.xlu0 %201 }
  0x86   :  { %v180_v30 = vpop.permute.xlu2 %179  ;;  %v117_v47 = vperm.slane %v91_v25, %v693_v41  ;;  %v224_v48 = vperm.slane %v202_v26, %v696_v42 }
  0x8d   :  { %v100_v28 = vpop.permute.xlu1 %99  ;;  %v211_v29 = vpop.permute.xlu0 %210 }
  0x8e   :  { %v688_v33 = vpop.permute.xlu2 %187  ;;  %v125_v60 = vperm.slane %v100_v28, %v693_v41  ;;  %v229_v4 = vperm.slane %v211_v29, %v696_v42 }
  0x95   :  { %v684_v31 = vpop.permute.xlu1 %108  ;;  %v686_v32 = vpop.permute.xlu0 %219 }
  0x96   :  { %v199_v39 = vpop.permute.xlu2 %198  ;;  %v130_v29 = vperm.slane %v684_v31, %v693_v41 }
  0x97   :  { %v222_v44 = vperm.slane %v199_v39, %v693_v41 }
  0x9e   :  { %v176_v34 = vpop.permute.xlu1 %175  ;;  %v208_v52 = vpop.permute.xlu2 %207 }
  0x9f   :  { %v50_v35 = vpop.permute.xlu0 %49  ;;  %v227_v1 = vperm.slane %v208_v52, %v693_v41 }
  0xa6   :  { %v184_v37 = vpop.permute.xlu1 %183 }
  0xa7   :  { %v55_v38 = vpop.permute.xlu0 %54 }
  0xae   :  { %v196_v43 = vpop.permute.xlu1 %195 }
  0xaf   :  { %v221_v45 = vperm.slane %v196_v43, %v690_v40  ;;  %v88_v46 = vpop.permute.xlu0 %87 }
  0xb0   :  { %v115_v49 = vperm.slane %v88_v46, %v690_v40 }
  0xb1   :  { %v223_v51 = vsel %vm118_vm0, %v222_v44, %v221_v45 }
  0xb2   :  { %v119_v53 = vsel %vm118_vm0, %v117_v47, %v115_v49  ;;  %v225_v54 = vsel %vm122_vm1, %v224_v48, %v223_v51 }
  0xb3   :  { %v123_v55 = vsel %vm122_vm1, %v121_v50, %v119_v53  ;;  %v261_v56 = vmul.f32 %v225_v54, %v176_v34  ;;  %v260_v57 = vmul.f32 %v225_v54, %v172_v20  ;;  %v217_v20 = vpop.permute.xlu2 %216 }
  0xb4   :  { %v165_v58 = vmul.f32 %v123_v55, %v55_v38  ;;  %v164_v59 = vmul.f32 %v123_v55, %v50_v35  ;;  %v232_v34 = vperm.slane %v217_v20, %v693_v41  ;;  %v36_v55 = vld [vmem:[%s939_s2 + $0x20] sm:$0xff] }
  0xb6   :  { %v205_v61 = vpop.permute.xlu1 %204  ;;  %v267_v62 = vadd.f32 %v261_v56, %v165_v58  ;;  %v266_v63 = vadd.f32 %v260_v57, %v164_v59  ;;  %v35_v56 = vld [vmem:[%s939_s2 + $0x18] sm:$0xff]  ;;  %v38_v57 = vld [vmem:[%s939_s2 + $0x30] sm:$0xff]  ;;  %v37_v58 = vld [vmem:[%s939_s2 + $0x28] sm:$0xf] }
  0xb7   :  { %v226_v2 = vperm.slane %v205_v61, %v690_v40  ;;  %v97_v3 = vpop.permute.xlu0 %96  ;;  %v40_v59 = vld [vmem:[%s939_s2 + $0x40] sm:$0xf] }
  0xb8   :  { %v124_v5 = vperm.slane %v97_v3, %v690_v40  ;;  %v713_v6 = vmul.f32 0.033333335, %v267_v62  ;;  %v715_v7 = vmul.f32 0.033333335, %v266_v63 }
  0xb9   :  { %v228_v9 = vsel %vm118_vm0, %v227_v1, %v226_v2 }
  0xba   :  { %v126_v10 = vsel %vm118_vm0, %v125_v60, %v124_v5  ;;  %v283_v11 = vsel %vm282_vm2, %v713_v6, -inf  ;;  %v279_v12 = vsel %vm278_vm3, %v715_v7, -inf  ;;  %v230_v13 = vsel %vm122_vm1, %v229_v4, %v228_v9 }
  0xbb   :  { %284 = vmax.xlane.f32.xlu2 %v283_v11  ;;  %280 = vmax.xlane.f32.xlu1 %v279_v12  ;;  %v128_v14 = vsel %vm122_vm1, %v127_v8, %v126_v10  ;;  %v263_v15 = vmul.f32 %v230_v13, %v184_v37  ;;  %v262_v16 = vmul.f32 %v230_v13, %v180_v30 }
  0xbc   :  { %v167_v21 = vmul.f32 %v128_v14, %v678_v22  ;;  %v166_v24 = vmul.f32 %v128_v14, %v676_v19  ;;  %v234_v37 = vperm.slane %v686_v32, %v696_v42  ;;  %v132_v19 = vperm.slane %v682_v27, %v696_v42 }
  0xbe   :  { %v214_v25 = vpop.permute.xlu1 %213  ;;  %v269_v26 = vadd.f32 %v263_v15, %v167_v21  ;;  %v268_v28 = vadd.f32 %v262_v16, %v166_v24 }
  0xbf   :  { %v231_v35 = vperm.slane %v214_v25, %v690_v40  ;;  %v106_v36 = vpop.permute.xlu0 %105 }
  0xc0   :  { %v129_v30 = vperm.slane %v106_v36, %v690_v40  ;;  %v735_v38 = vmul.f32 0.033333335, %v269_v26  ;;  %v737_v22 = vmul.f32 0.033333335, %v268_v28 }
  0xc1   :  { %v233_v39 = vsel %vm118_vm0, %v232_v34, %v231_v35 }
  0xc2   :  { %v131_v31 = vsel %vm118_vm0, %v130_v29, %v129_v30  ;;  %v289_v43 = vsel %vm282_vm2, %v735_v38, -inf  ;;  %v286_v44 = vsel %vm278_vm3, %v737_v22, -inf  ;;  %v235_v32 = vsel %vm122_vm1, %v234_v37, %v233_v39 }
  0xc3   :  { %290 = vmax.xlane.f32.xlu2 %v289_v43  ;;  %287 = vmax.xlane.f32.xlu0 %v286_v44  ;;  %v133_v45 = vsel %vm122_vm1, %v132_v19, %v131_v31  ;;  %v265_v46 = vmul.f32 %v235_v32, %v680_v23  ;;  %v264_v27 = vmul.f32 %v235_v32, %v688_v33  ;;  %v32_v23 = vld [vmem:[%s939_s2] sm:$0xff]  ;;  %v33_v33 = vld [vmem:[%s939_s2 + $0x8] sm:$0xff] }
  0xc4   :  { %v169_v47 = vmul.f32 %v133_v45, %v674_v18  ;;  %v168_v48 = vmul.f32 %v133_v45, %v672_v17  ;;  %v39_v18 = vld [vmem:[%s939_s2 + $0x38] sm:$0xff]  ;;  %v764_v17 = vld [vmem:[%s939_s2 + $0x10] sm:$0xf] }
  0xc6   :  { %v271_v49 = vadd.f32 %v265_v46, %v169_v47  ;;  %v270_v50 = vadd.f32 %v264_v27, %v168_v48 }
  0xc8   :  { %v277_v51 = vmul.f32 0.033333335, %v271_v49  ;;  %v276_v52 = vmul.f32 0.033333335, %v270_v50 }
  0xca   :  { %v295_v53 = vsel %vm282_vm2, %v277_v51, -inf  ;;  %v292_v54 = vsel %vm278_vm3, %v276_v52, -inf }
  0xcb   :  { %296 = vmax.xlane.f32.xlu2 %v295_v53  ;;  %293 = vmax.xlane.f32.xlu1 %v292_v54  ;;  %v42_v53 = vld [vmem:[%s940_s3 + $0x8] sm:$0x3] }
  0xd7   :  { %362 = vperm.xlu0 %567, %v32_v23  }
  0xdf   :  { %383 = vperm.xlu0 %567, %v39_v18  }
  0xe3   :  { %368 = vperm.xlu2 %569, %v764_v17  }
  0xe4   :  { %365 = vperm.xlu1 %568, %v33_v33  }
  0xe7   :  { %571 = vset.pattern.permute.xlu0 %v597_v0 }
  0xe8   :  { %455 = vperm.xlu0 %571, %v33_v33  }
  0xeb   :  { %374 = vperm.xlu2 %569, %v36_v55  }
  0xec   :  { %371 = vperm.xlu1 %568, %v35_v56  }
  0xf3   :  { %380 = vperm.xlu2 %569, %v38_v57  }
  0xf4   :  { %377 = vperm.xlu1 %568, %v37_v58  }
  0xfb   :  { %570 = vset.pattern.permute.xlu2 %v597_v0 }
  0xfc   :  { %386 = vperm.xlu1 %568, %v40_v59   ;;  %452 = vperm.xlu2 %570, %v32_v23  }
 0x104   :  { %572 = vset.pattern.permute.xlu1 %v597_v0  ;;  %464 = vperm.xlu2 %570, %v36_v55  }
 0x105   :  { %461 = vperm.xlu1 %572, %v35_v56  }
 0x10c   :  { %473 = vperm.xlu2 %570, %v39_v18  }
 0x10d   :  { %470 = vperm.xlu1 %572, %v38_v57  }
 0x12e   :  { %v285_v60 = vpop.xlane.xlu2 %284  ;;  %v281_v61 = vpop.xlane.xlu1 %280 }
 0x12f   :  { %v299_v62 = vsub.f32 %v713_v6, %v285_v60  ;;  %v298_v63 = vsub.f32 %v715_v7, %v281_v61 }
 0x131   :  { %v306_v1 = vmul.f32 1.442695, %v299_v62  ;;  %v304_v2 = vmul.f32 1.442695, %v298_v63 }
 0x133   :  { %573 = vpow2.f32 %v306_v1 }
 0x134   :  { %575 = vpow2.f32 %v304_v2 }
 0x136   :  { %v291_v3 = vpop.xlane.xlu2 %290  ;;  %v288_v4 = vpop.xlane.xlu0 %287 }
 0x137   :  { %v301_v5 = vsub.f32 %v735_v38, %v291_v3  ;;  %v300_v0 = vsub.f32 %v737_v22, %v288_v4 }
 0x139   :  { %v574_v8 = vpop.eup %573  ;;  %v310_v9 = vmul.f32 1.442695, %v301_v5  ;;  %v308_v10 = vmul.f32 1.442695, %v300_v0  ;;  %v43_v5 = vld [vmem:[%s940_s3 + $0x10] sm:$0xff] }
 0x13a   :  { %v576_v11 = vpop.eup %575  ;;  %v319_v12 = vsel %vm282_vm2, %v574_v8, 0.0 }
 0x13b   :  { %577 = vpow2.f32 %v310_v9  ;;  %v316_v6 = vsel %vm278_vm3, %v576_v11, 0.0  ;;  %320 = vadd.xlane.f32.xlu1 %v319_v12  ;;  %v44_v12 = vld [vmem:[%s940_s3 + $0x18] sm:$0x3] }
 0x13c   :  { %579 = vpow2.f32 %v308_v10  ;;  %317 = vadd.xlane.f32.xlu0 %v316_v6 }
 0x13e   :  { %v297_v7 = vpop.xlane.xlu2 %296  ;;  %v294_v13 = vpop.xlane.xlu1 %293 }
 0x13f   :  { %v303_v14 = vsub.f32 %v277_v51, %v297_v7  ;;  %v302_v15 = vsub.f32 %v276_v52, %v294_v13 }
 0x141   :  { %v794_v16 = vpop.eup %577  ;;  %v314_v20 = vmul.f32 1.442695, %v303_v14  ;;  %v312_v21 = vmul.f32 1.442695, %v302_v15 }
 0x142   :  { %v796_v24 = vpop.eup %579  ;;  %v325_v25 = vsel %vm282_vm2, %v794_v16, 0.0 }
 0x143   :  { %581 = vpow2.f32 %v314_v20  ;;  %v322_v26 = vsel %vm278_vm3, %v796_v24, 0.0 }
 0x144   :  { %583 = vpow2.f32 %v312_v21  ;;  %326 = vadd.xlane.f32.xlu0 %v325_v25  ;;  %323 = vadd.xlane.f32.xlu2 %v322_v26 }
 0x146   :  { %v369_v37 = vpop.permute.xlu2 %368 }
 0x147   :  { %v391_v33 = vperm.slane %v369_v37, %v696_v42 }
 0x149   :  { %v802_v28 = vpop.eup %581  ;;  %v363_v31 = vpop.permute.xlu0 %362 }
 0x14a   :  { %v804_v29 = vpop.eup %583  ;;  %v331_v34 = vsel %vm282_vm2, %v802_v28, 0.0  ;;  %v388_v51 = vperm.slane %v363_v31, %v690_v40 }
 0x14b   :  { %v328_v35 = vsel %vm278_vm3, %v804_v29, 0.0 }
 0x14c   :  { %329 = vadd.xlane.f32.xlu1 %v328_v35  ;;  %332 = vadd.xlane.f32.xlu2 %v331_v34  ;;  %v45_v35 = vld [vmem:[%s940_s3 + $0x20] sm:$0xff] }
 0x14e   :  { %v375_v38 = vpop.permute.xlu2 %374 }
 0x151   :  { %v819_v32 = vpop.permute.xlu0 %383 }
 0x152   :  { %v399_v37 = vperm.slane %v819_v32, %v693_v41 }
 0x156   :  { %v366_v36 = vpop.permute.xlu1 %365  ;;  %v811_v19 = vpop.permute.xlu2 %380 }
 0x157   :  { %v389_v50 = vperm.slane %v366_v36, %v693_v41  ;;  %v398_v25 = vperm.slane %v811_v19, %v690_v40 }
 0x158   :  { %476 = vperm.xlu0 %571, %v40_v59  }
 0x159   :  { %v390_v23 = vsel %vm118_vm0, %v389_v50, %v388_v51 }
 0x15a   :  { %v825_v27 = vpop.permute.xlu0 %455  ;;  %v392_v59 = vsel %vm122_vm1, %v391_v33, %v390_v23 }
 0x15e   :  { %v372_v30 = vpop.permute.xlu1 %371  ;;  %v815_v43 = vpop.permute.xlu2 %452 }
 0x15f   :  { %v393_v1 = vperm.slane %v372_v30, %v690_v40 }
 0x164   :  { %467 = vperm.xlu2 %570, %v37_v58  }
 0x165   :  { %458 = vperm.xlu1 %572, %v764_v17   ;;  %v41_v17 = vld [vmem:[%s940_s3] sm:$0xff] }
 0x166   :  { %v378_v22 = vpop.permute.xlu1 %377  ;;  %v821_v45 = vpop.permute.xlu2 %464 }
 0x167   :  { %v396_v4 = vperm.slane %v378_v22, %v696_v42  ;;  %v484_v51 = vperm.slane %v821_v45, %v693_v41 }
 0x16e   :  { %v813_v39 = vpop.permute.xlu1 %386  ;;  %v827_v48 = vpop.permute.xlu2 %473 }
 0x16f   :  { %v401_v34 = vperm.slane %v813_v39, %v696_v42  ;;  %v400_v39 = vsel %vm118_vm0, %v399_v37, %v398_v25  ;;  %v489_v45 = vperm.slane %v827_v48, %v693_v41 }
 0x171   :  { %v402_v32 = vsel %vm122_vm1, %v401_v34, %v400_v39 }
 0x177   :  { %v817_v44 = vpop.permute.xlu1 %461 }
 0x178   :  { %v483_v31 = vperm.slane %v817_v44, %v690_v40 }
 0x17f   :  { %v823_v46 = vpop.permute.xlu1 %470 }
 0x1ae   :  { %v321_v47 = vpop.xlane.xlu1 %320 }
 0x1af   :  { %585 = vrcp.f32 %v321_v47  ;;  %v318_v49 = vpop.xlane.xlu0 %317 }
 0x1b0   :  { %587 = vrcp.f32 %v318_v49 }
 0x1b5   :  { %v586_v52 = vpop.eup %585 }
 0x1b6   :  { %v588_v54 = vpop.eup %587  ;;  %v341_v18 = vmul.f32 %v586_v52, %v574_v8  ;;  %v394_v8 = vperm.slane %v375_v38, %v693_v41  ;;  %v46_v38 = vld [vmem:[%s940_s3 + $0x28] sm:$0x3] }
 0x1b7   :  { %v324_v55 = vpop.xlane.xlu2 %323  ;;  %v327_v56 = vpop.xlane.xlu0 %326  ;;  %v340_v57 = vmul.f32 %v588_v54, %v576_v11 }
 0x1b8   :  { %589 = vrcp.f32 %v324_v55  ;;  %v839_v58 = vmul.f32 %v341_v18, %v42_v53  ;;  %v395_v7 = vsel %vm118_vm0, %v394_v8, %v393_v1  ;;  %v478_v55 = vperm.slane %v815_v43, %v690_v40 }
 0x1b9   :  { %591 = vrcp.f32 %v327_v56  ;;  %v842_v60 = vmul.f32 %v340_v57, %v41_v17  ;;  %v397_v14 = vsel %vm122_vm1, %v396_v4, %v395_v7  ;;  %v488_v17 = vperm.slane %v823_v46, %v690_v40 }
 0x1ba   :  { %v428_v61 = vmul.f32 %v392_v59, %v839_v58  ;;  %v479_v56 = vperm.slane %v825_v27, %v693_v41 }
 0x1bb   :  { %v427_v62 = vmul.f32 %v392_v59, %v842_v60  ;;  %v490_v59 = vsel %vm118_vm0, %v489_v45, %v488_v17 }
 0x1bc   :  { %v436_v63 = vsel %vm282_vm2, %v428_v61, 0.0 }
 0x1bd   :  { %437 = vadd.xlane.f32.xlu0 %v436_v63  ;;  %v433_v2 = vsel %vm278_vm3, %v427_v62, 0.0  ;;  %v480_v63 = vsel %vm118_vm0, %v479_v56, %v478_v55 }
 0x1be   :  { %v590_v3 = vpop.eup %589  ;;  %434 = vadd.xlane.f32.xlu2 %v433_v2 }
 0x1bf   :  { %v592_v0 = vpop.eup %591  ;;  %v330_v9 = vpop.xlane.xlu1 %329  ;;  %v342_v11 = vmul.f32 %v590_v3, %v796_v24 }
 0x1c0   :  { %v333_v10 = vpop.xlane.xlu2 %332  ;;  %593 = vrcp.f32 %v330_v9  ;;  %v343_v6 = vmul.f32 %v592_v0, %v794_v16 }
 0x1c1   :  { %595 = vrcp.f32 %v333_v10  ;;  %v348_v13 = vmul.f32 %v342_v11, %v43_v5 }
 0x1c2   :  { %v349_v15 = vmul.f32 %v343_v6, %v44_v12 }
 0x1c3   :  { %v429_v20 = vmul.f32 %v397_v14, %v348_v13 }
 0x1c4   :  { %v430_v21 = vmul.f32 %v397_v14, %v349_v15 }
 0x1c5   :  { %v439_v24 = vsel %vm278_vm3, %v429_v20, 0.0 }
 0x1c6   :  { %v594_v26 = vpop.eup %593  ;;  %440 = vadd.xlane.f32.xlu1 %v439_v24  ;;  %v442_v16 = vsel %vm282_vm2, %v430_v21, 0.0 }
 0x1c7   :  { %v596_v36 = vpop.eup %595  ;;  %443 = vadd.xlane.f32.xlu2 %v442_v16  ;;  %v344_v22 = vmul.f32 %v594_v26, %v804_v29  ;;  %v485_v29 = vsel %vm118_vm0, %v484_v51, %v483_v31 }
 0x1c8   :  { %v468_v30 = vpop.permute.xlu2 %467  ;;  %v345_v19 = vmul.f32 %v596_v36, %v802_v28 }
 0x1c9   :  { %v350_v47 = vmul.f32 %v344_v22, %v45_v35  ;;  %v486_v49 = vperm.slane %v468_v30, %v696_v42 }
 0x1ca   :  { %v351_v50 = vmul.f32 %v345_v19, %v46_v38  ;;  %v477_v23 = vpop.permute.xlu0 %476 }
 0x1cb   :  { %v431_v52 = vmul.f32 %v402_v32, %v350_v47  ;;  %v487_v44 = vsel %vm122_vm1, %v486_v49, %v485_v29  ;;  %v491_v33 = vperm.slane %v477_v23, %v696_v42 }
 0x1cc   :  { %v432_v53 = vmul.f32 %v402_v32, %v351_v50  ;;  %v519_v18 = vmul.f32 %v487_v44, %v348_v13  ;;  %v520_v3 = vmul.f32 %v487_v44, %v349_v15 }
 0x1cd   :  { %v445_v28 = vsel %vm278_vm3, %v431_v52, 0.0  ;;  %v492_v62 = vsel %vm122_vm1, %v491_v33, %v490_v59 }
 0x1ce   :  { %v448_v54 = vsel %vm282_vm2, %v432_v53, 0.0  ;;  %446 = vadd.xlane.f32.xlu0 %v445_v28  ;;  %v529_v57 = vsel %vm278_vm3, %v519_v18, 0.0  ;;  %v522_v1 = vmul.f32 %v492_v62, %v351_v50  ;;  %v532_v4 = vsel %vm282_vm2, %v520_v3, 0.0 }
 0x1cf   :  { %449 = vadd.xlane.f32.xlu1 %v448_v54 }
 0x1d0   :  { %v538_v2 = vsel %vm282_vm2, %v522_v1, 0.0 }
 0x1d6   :  { %530 = vadd.xlane.f32.xlu0 %v529_v57 }
 0x1d7   :  { %v459_v61 = vpop.permute.xlu1 %458 }
 0x1d8   :  { %v481_v46 = vperm.slane %v459_v61, %v696_v42  ;;  %v521_v42 = vmul.f32 %v492_v62, %v350_v47 }
 0x1da   :  { %v482_v48 = vsel %vm122_vm1, %v481_v46, %v480_v63  ;;  %v535_v5 = vsel %vm278_vm3, %v521_v42, 0.0 }
 0x1db   :  { %v517_v40 = vmul.f32 %v482_v48, %v842_v60  ;;  %v518_v43 = vmul.f32 %v482_v48, %v839_v58 }
 0x1dd   :  { %v523_v41 = vsel %vm278_vm3, %v517_v40, 0.0  ;;  %v526_v27 = vsel %vm282_vm2, %v518_v43, 0.0 }
 0x1de   :  { %524 = vadd.xlane.f32.xlu1 %v523_v41  ;;  %527 = vadd.xlane.f32.xlu2 %v526_v27 }
 0x1df   :  { %539 = vadd.xlane.f32.xlu0 %v538_v2 }
 0x1e6   :  { %533 = vadd.xlane.f32.xlu1 %v532_v4  ;;  %536 = vadd.xlane.f32.xlu2 %v535_v5 }
 0x230   :  { %v438_v60 = vpop.xlane.xlu0 %437 }
 0x231   :  { %v435_v0 = vpop.xlane.xlu2 %434 }
 0x239   :  { %v441_v58 = vpop.xlane.xlu1 %440 }
 0x23a   :  { %v444_v9 = vpop.xlane.xlu2 %443 }
 0x241   :  { %v447_v8 = vpop.xlane.xlu0 %446 }
 0x242   :  { %v450_v10 = vpop.xlane.xlu1 %449 }
 0x249   :  { %v531_v11 = vpop.xlane.xlu0 %530 }
 0x24a   :  { %v544_v12 = vsel %vm541_vm4, %v441_v58, %v531_v11 }
 0x24b   :  { %552 = vst.msk [vmem:[%s941_s4 + $0x10] sm:$0xff] %vm548_vm5, %v544_v12 }
 0x251   :  { %v525_v6 = vpop.xlane.xlu1 %524  ;;  %v528_v7 = vpop.xlane.xlu2 %527 }
 0x252   :  { %v542_v13 = vsel %vm541_vm4, %v435_v0, %v525_v6  ;;  %v543_v14 = vsel %vm541_vm4, %v438_v60, %v528_v7  ;;  %v540_v15 = vpop.xlane.xlu0 %539 }
 0x253   :  { %549 = vst.msk [vmem:[%s941_s4] sm:$0xff] %vm548_vm5, %v542_v13  ;;  %v547_v20 = vsel %vm541_vm4, %v450_v10, %v540_v15 }
 0x254   :  { %551 = vst.msk [vmem:[%s941_s4 + $0x8] sm:$0x3] %vm550_vm6, %v543_v14 }
 0x255   :  { %555 = vst.msk [vmem:[%s941_s4 + $0x28] sm:$0x3] %vm550_vm6, %v547_v20 }
 0x259   :  { %v534_v21 = vpop.xlane.xlu1 %533  ;;  %v537_v25 = vpop.xlane.xlu2 %536 }
 0x25a   :  { %v545_v24 = vsel %vm541_vm4, %v444_v9, %v534_v21  ;;  %v546_v26 = vsel %vm541_vm4, %v447_v8, %v537_v25 }
 0x25b   :  { %553 = vst.msk [vmem:[%s941_s4 + $0x18] sm:$0x3] %vm550_vm6, %v545_v24 }
 0x25c   :  { %554 = vst.msk [vmem:[%s941_s4 + $0x20] sm:$0xff] %vm548_vm5, %v546_v26 }

</bundles_post_ra>
